<compile_context>
chip_gen: v7x
topology: tpu7x:2x2x1
jax: 0.10.0
libtpu: 0.0.40
codegen_flags: <defaults>
</compile_context>

<pallas_src>
import jax
import jax.numpy as jnp
from jax.experimental import pallas as pl
from jax.experimental.pallas import tpu as pltpu


def _round_up(x: int, m: int) -> int:
    return ((x + m - 1) // m) * m


# ---------------------------------------------------------------------------
# Kernel
# ---------------------------------------------------------------------------
def _make_kernel(h1: int, enc: int, h2: int, din: int, seg: int):
    """Builds the fused MLP kernel for static layer widths.

    b_ref holds the four biases concatenated at 128-lane-aligned segments:
      [0:h1]            -> b1
      [seg:seg+enc]     -> b2
      [2*seg:2*seg+h2]  -> b3
      [3*seg:3*seg+din] -> b4
    """

    def kernel(x_ref, w1_ref, w2_ref, w3_ref, w4_ref, b_ref, out_ref):
        cdt = w1_ref.dtype                       # MXU compute dtype (f32/bf16)
        x = x_ref[...].astype(cdt)               # cast in VMEM, not in HBM

        # Encoder: Linear(din -> 32) + ReLU  (f32 accumulate / f32 VPU math)
        h = jnp.dot(x, w1_ref[...], preferred_element_type=jnp.float32)
        h = jnp.maximum(h + b_ref[:, 0:h1], 0.0)

        # Encoder: Linear(32 -> enc) + ReLU
        h = jnp.dot(h.astype(cdt), w2_ref[...],
                    preferred_element_type=jnp.float32)
        h = jnp.maximum(h + b_ref[:, seg:seg + enc], 0.0)

        # Decoder: Linear(enc -> 32) + ReLU
        h = jnp.dot(h.astype(cdt), w3_ref[...],
                    preferred_element_type=jnp.float32)
        h = jnp.maximum(h + b_ref[:, 2 * seg:2 * seg + h2], 0.0)

        # Decoder: Linear(32 -> din) + Sigmoid
        h = jnp.dot(h.astype(cdt), w4_ref[...],
                    preferred_element_type=jnp.float32)
        h = h + b_ref[:, 3 * seg:3 * seg + din]

        # Exact sigmoid via EUP tanh: no exp(-h) overflow, no approx-recip error.
        out_ref[...] = (0.5 * (jnp.tanh(0.5 * h) + 1.0)).astype(out_ref.dtype)

    return kernel


# ---------------------------------------------------------------------------
# Parameter packing (hoisted out of the forward hot path)
# ---------------------------------------------------------------------------
def pack_params(params, compute_dtype=jnp.float32):
    """Cast weights once and pack the four biases into one lane-segmented buffer."""
    w1 = params["w1"].astype(compute_dtype)      # (din, 32)
    w2 = params["w2"].astype(compute_dtype)      # (32, enc)
    w3 = params["w3"].astype(compute_dtype)      # (enc, 32)
    w4 = params["w4"].astype(compute_dtype)      # (32, din)

    din, h1 = w1.shape
    enc = w2.shape[1]
    h2 = w3.shape[1]
    dims = (h1, enc, h2, din)

    seg = max(128, _round_up(max(dims), 128))    # per-bias lane segment
    b_all = jnp.zeros((1, 4 * seg), jnp.float32)
    for i, (b, n) in enumerate(
            zip((params["b1"], params["b2"], params["b3"], params["b4"]), dims)):
        b_all = b_all.at[0, i * seg:i * seg + n].set(b.astype(jnp.float32))

    return {"w1": w1, "w2": w2, "w3": w3, "w4": w4, "b_all": b_all,
            "dims": dims, "seg": seg}


# ---------------------------------------------------------------------------
# Batch tiling heuristic
# ---------------------------------------------------------------------------
def _pick_batch_tiling(B: int, align: int, tb_max: int, min_tiles: int = 4):
    """Return (tile_rows, padded_batch).

    Prefers an aligned divisor of B (no batch-pad copy) that still yields
    >= min_tiles grid steps (so both v7x TensorCores get work) while keeping
    tiles large enough to amortize per-grid-step overhead.
    """
    tb_max = max(align, (tb_max // align) * align)
    if B <= align:
        return align, align

    want_tiles = min(min_tiles, max(1, B // align))
    tb_ideal = min(tb_max, max(align, (B // want_tiles) // align * align))

    if B % align == 0:
        tb_floor = max(align, tb_ideal // 8)     # don't accept overhead-dominated tiles
        tb = tb_ideal
        while tb >= tb_floor:
            if B % tb == 0:
                return tb, B                     # exact divisor -> no padding copy
            tb -= align

    # Fall back: pad the batch up to a multiple of the ideal tile.
    return tb_ideal, _round_up(B, tb_ideal)


# ---------------------------------------------------------------------------
# Forward
# ---------------------------------------------------------------------------
def threat_autoencoder_forward(x, packed, *, out_dtype=None, tb_max=4096,
                               min_tiles=4):
    """Fused autoencoder forward.

    x      : [B, input_dim] array (f32 or bf16); streamed at its native dtype.
    packed : output of pack_params (weights pre-cast, biases concatenated).
    out_dtype : output dtype (default: x.dtype); pass bf16 for bf16 streaming.
    """
    B, din = x.shape
    h1, enc, h2, din_p = packed["dims"]
    assert din == din_p, "input feature dim does not match packed params"
    out_dtype = x.dtype if out_dtype is None else out_dtype

    # Sublane alignment driven by the narrowest streamed dtype.
    itemsize = min(jnp.dtype(x.dtype).itemsize, jnp.dtype(out_dtype).itemsize)
    align = {4: 8, 2: 16, 1: 32}[itemsize]

    tb, b_pad = _pick_batch_tiling(B, align, tb_max, min_tiles)
    n_tiles = b_pad // tb

    # Batch-pad copy only when no suitable divisor of B exists.
    x_in = x if b_pad == B else jnp.zeros((b_pad, din), x.dtype).at[:B].set(x)

    kernel = _make_kernel(h1, enc, h2, din, packed["seg"])

    def resident(arr):   # weights/biases: constant index_map -> VMEM-resident
        return pl.BlockSpec(arr.shape, lambda i: (0, 0))

    # VMEM budget: double-buffered streamed tiles + resident weights.
    tile_bytes = tb * din * (jnp.dtype(x.dtype).itemsize
                             + jnp.dtype(out_dtype).itemsize) * 2
    weight_bytes = sum(int(a.size) * jnp.dtype(a.dtype).itemsize
                       for a in (packed["w1"], packed["w2"], packed["w3"],
                                 packed["w4"], packed["b_all"]))
    vmem_need = tile_bytes + weight_bytes
    cp_kwargs = {}
    if vmem_need > (12 << 20):   # only raise past v5e's 16 MiB default when needed
        cp_kwargs["vmem_limit_bytes"] = int(min(vmem_need + (8 << 20), 48 << 20))

    out_p = pl.pallas_call(
        kernel,
        out_shape=jax.ShapeDtypeStruct((b_pad, din), out_dtype),
        grid_spec=pltpu.PrefetchScalarGridSpec(
            num_scalar_prefetch=0,
            grid=(n_tiles,),
            in_specs=[
                pl.BlockSpec((tb, din), lambda i: (i, 0)),   # x: batch-tiled
                resident(packed["w1"]), resident(packed["w2"]),
                resident(packed["w3"]), resident(packed["w4"]),
                resident(packed["b_all"]),
            ],
            out_specs=pl.BlockSpec((tb, din), lambda i: (i, 0)),
        ),
        compiler_params=pltpu.CompilerParams(
            dimension_semantics=("parallel",), **cp_kwargs),
    )(x_in, packed["w1"], packed["w2"], packed["w3"], packed["w4"],
      packed["b_all"])

    return out_p if b_pad == B else out_p[:B]


# ---------------------------------------------------------------------------
# Init + reference
# ---------------------------------------------------------------------------
def init_params(key, input_dim=50, encoding_dim=20):
    """Deterministic init matching the nn.Linear shapes of ThreatAutoencoder.

    Weights stored [in_features, out_features] (transposed vs PyTorch) so the
    kernel computes x @ W directly.
    """
    keys = jax.random.split(key, 8)

    def linear(kw, kb, fan_in, fan_out):
        bound = 1.0 / jnp.sqrt(fan_in)
        w = jax.random.uniform(kw, (fan_in, fan_out), jnp.float32, -bound, bound)
        b = jax.random.uniform(kb, (fan_out,), jnp.float32, -bound, bound)
        return w, b

    w1, b1 = linear(keys[0], keys[1], input_dim, 32)
    w2, b2 = linear(keys[2], keys[3], 32, encoding_dim)
    w3, b3 = linear(keys[4], keys[5], encoding_dim, 32)
    w4, b4 = linear(keys[6], keys[7], 32, input_dim)
    return {"w1": w1, "b1": b1, "w2": w2, "b2": b2,
            "w3": w3, "b3": b3, "w4": w4, "b4": b4}


def reference_forward(x, params):
    """Plain-JAX reference for correctness checking."""
    h = jnp.maximum(x @ params["w1"] + params["b1"], 0.0)
    h = jnp.maximum(h @ params["w2"] + params["b2"], 0.0)
    h = jnp.maximum(h @ params["w3"] + params["b3"], 0.0)
    return jax.nn.sigmoid(h @ params["w4"] + params["b4"])


if __name__ == "__main__":
    key = jax.random.PRNGKey(0)
    k_param, k_x1, k_x2, k_x3 = jax.random.split(key, 4)

    input_dim, encoding_dim = 50, 20
    params = init_params(k_param, input_dim=input_dim, encoding_dim=encoding_dim)

    packed_f32 = pack_params(params, jnp.float32)
    packed_bf16 = pack_params(params, jnp.bfloat16)

    # --- test 1: small batch, f32 compute + f32 I/O, single grid tile ---
    B1 = 8
    x1 = jax.random.normal(k_x1, (B1, input_dim), dtype=jnp.float32)
    out1 = jax.block_until_ready(threat_autoencoder_forward(x1, packed_f32))
    ref1 = reference_forward(x1, params)
    assert out1.shape == (B1, input_dim)
    assert out1.dtype == jnp.float32
    assert bool(jnp.all(jnp.isfinite(out1)))
    assert jnp.allclose(out1, ref1, atol=1e-3, rtol=1e-3), "f32 mismatch"

    # --- test 2: B=1000, bf16 compute with f32 streaming I/O, multi-tile,
    #             divisor tiling path (tb=200, no batch-pad copy) ---
    B2 = 1000
    x2 = jax.random.normal(k_x2, (B2, input_dim), dtype=jnp.float32)
    out2 = jax.block_until_ready(threat_autoencoder_forward(x2, packed_bf16))
    ref2 = reference_forward(x2, params)
    assert out2.shape == (B2, input_dim)
    assert jnp.allclose(out2, ref2, atol=3e-2, rtol=3e-2), "bf16-compute mismatch"

    # --- test 3: full bf16 streaming (bf16 x in, bf16 out), 16-row tiles ---
    B3 = 64
    x3 = jax.random.normal(k_x3, (B3, input_dim), dtype=jnp.float32)
    out3 = jax.block_until_ready(
        threat_autoencoder_forward(x3.astype(jnp.bfloat16), packed_bf16,
                                   out_dtype=jnp.bfloat16))
    ref3 = reference_forward(x3.astype(jnp.bfloat16).astype(jnp.float32), params)
    assert out3.shape == (B3, input_dim)
    assert out3.dtype == jnp.bfloat16
    assert jnp.allclose(out3.astype(jnp.float32), ref3,
                        atol=4e-2, rtol=4e-2), "bf16-I/O mismatch"

    print("KERNEL_OK")
</pallas_src>

<mosaic_0001>
module attributes {stable_mosaic.version = 11 : i64} {
  func.func @kernel(%arg0: i32, %arg1: memref<8x50xf32, #tpu.memory_space<vmem>>, %arg2: memref<50x32xf32, #tpu.memory_space<vmem>>, %arg3: memref<32x20xf32, #tpu.memory_space<vmem>>, %arg4: memref<20x32xf32, #tpu.memory_space<vmem>>, %arg5: memref<32x50xf32, #tpu.memory_space<vmem>>, %arg6: memref<1x512xf32, #tpu.memory_space<vmem>>, %arg7: memref<8x50xf32, #tpu.memory_space<vmem>>) attributes {dimension_semantics = [#tpu.dimension_semantics<parallel>], iteration_bounds = array<i64: 1>, scalar_prefetch = 0 : i64, scratch_operands = 0 : i64, tpu.core_type = #tpu.core_type<tc>, window_params = [{transform_indices = @transform_0, window_bounds = array<i64: 8, 50>}, {pipeline_mode = #tpu.pipeline_mode<synchronous>, transform_indices = @transform_1, window_bounds = array<i64: 50, 32>}, {pipeline_mode = #tpu.pipeline_mode<synchronous>, transform_indices = @transform_2, window_bounds = array<i64: 32, 20>}, {pipeline_mode = #tpu.pipeline_mode<synchronous>, transform_indices = @transform_3, window_bounds = array<i64: 20, 32>}, {pipeline_mode = #tpu.pipeline_mode<synchronous>, transform_indices = @transform_4, window_bounds = array<i64: 32, 50>}, {pipeline_mode = #tpu.pipeline_mode<synchronous>, transform_indices = @transform_5, window_bounds = array<i64: 1, 512>}, {transform_indices = @transform_6, window_bounds = array<i64: 8, 50>}]} {
    %c0 = arith.constant 0 : index
    %c0_0 = arith.constant 0 : index
    %0 = vector.load %arg1[%c0, %c0_0] : memref<8x50xf32, #tpu.memory_space<vmem>>, vector<8x50xf32>
    %c0_1 = arith.constant 0 : index
    %c0_2 = arith.constant 0 : index
    %1 = vector.load %arg2[%c0_1, %c0_2] : memref<50x32xf32, #tpu.memory_space<vmem>>, vector<50x32xf32>
    %cst = arith.constant dense<0.000000e+00> : vector<8x32xf32>
    %2 = tpu.matmul %0, %1, %cst {dimension_numbers = #tpu.dot_dimension_numbers<[1], [0], [0], [1], [0, 0, 1, 1], [], []>} : vector<8x50xf32>, vector<50x32xf32>, vector<8x32xf32> -> vector<8x32xf32>
    %c0_3 = arith.constant 0 : index
    %c0_4 = arith.constant 0 : index
    %3 = vector.load %arg6[%c0_3, %c0_4] : memref<1x512xf32, #tpu.memory_space<vmem>>, vector<1x32xf32>
    %4 = vector.broadcast %3 : vector<1x32xf32> to vector<8x32xf32>
    %5 = arith.addf %2, %4 : vector<8x32xf32>
    %cst_5 = arith.constant 0.000000e+00 : f32
    %6 = vector.broadcast %cst_5 : f32 to vector<8x32xf32>
    %7 = arith.maximumf %5, %6 : vector<8x32xf32>
    %c0_6 = arith.constant 0 : index
    %c0_7 = arith.constant 0 : index
    %8 = vector.load %arg3[%c0_6, %c0_7] : memref<32x20xf32, #tpu.memory_space<vmem>>, vector<32x20xf32>
    %cst_8 = arith.constant dense<0.000000e+00> : vector<8x20xf32>
    %9 = tpu.matmul %7, %8, %cst_8 {dimension_numbers = #tpu.dot_dimension_numbers<[1], [0], [0], [1], [0, 0, 1, 1], [], []>} : vector<8x32xf32>, vector<32x20xf32>, vector<8x20xf32> -> vector<8x20xf32>
    %c0_9 = arith.constant 0 : index
    %c128 = arith.constant 128 : index
    %10 = vector.load %arg6[%c0_9, %c128] : memref<1x512xf32, #tpu.memory_space<vmem>>, vector<1x20xf32>
    %11 = vector.broadcast %10 : vector<1x20xf32> to vector<8x20xf32>
    %12 = arith.addf %9, %11 : vector<8x20xf32>
    %cst_10 = arith.constant 0.000000e+00 : f32
    %13 = vector.broadcast %cst_10 : f32 to vector<8x20xf32>
    %14 = arith.maximumf %12, %13 : vector<8x20xf32>
    %c0_11 = arith.constant 0 : index
    %c0_12 = arith.constant 0 : index
    %15 = vector.load %arg4[%c0_11, %c0_12] : memref<20x32xf32, #tpu.memory_space<vmem>>, vector<20x32xf32>
    %cst_13 = arith.constant dense<0.000000e+00> : vector<8x32xf32>
    %16 = tpu.matmul %14, %15, %cst_13 {dimension_numbers = #tpu.dot_dimension_numbers<[1], [0], [0], [1], [0, 0, 1, 1], [], []>} : vector<8x20xf32>, vector<20x32xf32>, vector<8x32xf32> -> vector<8x32xf32>
    %c0_14 = arith.constant 0 : index
    %c256 = arith.constant 256 : index
    %17 = vector.load %arg6[%c0_14, %c256] : memref<1x512xf32, #tpu.memory_space<vmem>>, vector<1x32xf32>
    %18 = vector.broadcast %17 : vector<1x32xf32> to vector<8x32xf32>
    %19 = arith.addf %16, %18 : vector<8x32xf32>
    %cst_15 = arith.constant 0.000000e+00 : f32
    %20 = vector.broadcast %cst_15 : f32 to vector<8x32xf32>
    %21 = arith.maximumf %19, %20 : vector<8x32xf32>
    %c0_16 = arith.constant 0 : index
    %c0_17 = arith.constant 0 : index
    %22 = vector.load %arg5[%c0_16, %c0_17] : memref<32x50xf32, #tpu.memory_space<vmem>>, vector<32x50xf32>
    %cst_18 = arith.constant dense<0.000000e+00> : vector<8x50xf32>
    %23 = tpu.matmul %21, %22, %cst_18 {dimension_numbers = #tpu.dot_dimension_numbers<[1], [0], [0], [1], [0, 0, 1, 1], [], []>} : vector<8x32xf32>, vector<32x50xf32>, vector<8x50xf32> -> vector<8x50xf32>
    %c0_19 = arith.constant 0 : index
    %c384 = arith.constant 384 : index
    %24 = vector.load %arg6[%c0_19, %c384] : memref<1x512xf32, #tpu.memory_space<vmem>>, vector<1x50xf32>
    %25 = vector.broadcast %24 : vector<1x50xf32> to vector<8x50xf32>
    %26 = arith.addf %23, %25 : vector<8x50xf32>
    %cst_20 = arith.constant 5.000000e-01 : f32
    %27 = vector.broadcast %cst_20 : f32 to vector<8x50xf32>
    %28 = arith.mulf %27, %26 : vector<8x50xf32>
    %29 = math.tanh %28 : vector<8x50xf32>
    %cst_21 = arith.constant 1.000000e+00 : f32
    %30 = vector.broadcast %cst_21 : f32 to vector<8x50xf32>
    %31 = arith.addf %29, %30 : vector<8x50xf32>
    %cst_22 = arith.constant 5.000000e-01 : f32
    %32 = vector.broadcast %cst_22 : f32 to vector<8x50xf32>
    %33 = arith.mulf %32, %31 : vector<8x50xf32>
    %c0_23 = arith.constant 0 : index
    %c0_24 = arith.constant 0 : index
    %34 = vector.load %arg7[%c0_23, %c0_24] : memref<8x50xf32, #tpu.memory_space<vmem>>, vector<8x50xf32>
    tpu.vector_store %arg7[%c0_23, %c0_24], %33 {strides = array<i32>} : memref<8x50xf32, #tpu.memory_space<vmem>>, vector<8x50xf32>,
    return
  }
  func.func @transform_0(%arg0: i32) -> (i32, i32) {
    %c0_i32 = arith.constant 0 : i32
    %c0_i32_0 = arith.constant 0 : i32
    return %arg0, %c0_i32 : i32, i32
  }
  func.func @transform_1(%arg0: i32) -> (i32, i32) {
    %c0_i32 = arith.constant 0 : i32
    %c0_i32_0 = arith.constant 0 : i32
    %c0_i32_1 = arith.constant 0 : i32
    return %c0_i32, %c0_i32_0 : i32, i32
  }
  func.func @transform_2(%arg0: i32) -> (i32, i32) {
    %c0_i32 = arith.constant 0 : i32
    %c0_i32_0 = arith.constant 0 : i32
    %c0_i32_1 = arith.constant 0 : i32
    return %c0_i32, %c0_i32_0 : i32, i32
  }
  func.func @transform_3(%arg0: i32) -> (i32, i32) {
    %c0_i32 = arith.constant 0 : i32
    %c0_i32_0 = arith.constant 0 : i32
    %c0_i32_1 = arith.constant 0 : i32
    return %c0_i32, %c0_i32_0 : i32, i32
  }
  func.func @transform_4(%arg0: i32) -> (i32, i32) {
    %c0_i32 = arith.constant 0 : i32
    %c0_i32_0 = arith.constant 0 : i32
    %c0_i32_1 = arith.constant 0 : i32
    return %c0_i32, %c0_i32_0 : i32, i32
  }
  func.func @transform_5(%arg0: i32) -> (i32, i32) {
    %c0_i32 = arith.constant 0 : i32
    %c0_i32_0 = arith.constant 0 : i32
    %c0_i32_1 = arith.constant 0 : i32
    return %c0_i32, %c0_i32_0 : i32, i32
  }
  func.func @transform_6(%arg0: i32) -> (i32, i32) {
    %c0_i32 = arith.constant 0 : i32
    %c0_i32_0 = arith.constant 0 : i32
    return %arg0, %c0_i32 : i32, i32
  }
}

</mosaic_0001>

<bundles_post_ra>
// kernel: tpu_custom_call.1
= control target key start
LH: loop header
LB: loop body
LE: loop exit
PB: predicated region body
PF: predicated region fallthrough
CT: control target
= control target key end

     0   :  { %v530_v3 = vmov 0.0|0.0   ;;  %vm531_vm0 = vmmov 0   ;;  %v532_v6 = vmov 0.0   ;;  %s658_s0 = inlined_call_operand.vmem [shape: f32[8,50], index: 0, kind: input, shape index: {}]   ;;  %s659_s1 = inlined_call_operand.vmem [shape: f32[50,32], index: 1, kind: input, shape index: {}]   ;;  %s660_s2 = inlined_call_operand.vmem [shape: f32[32,20], index: 2, kind: input, shape index: {}]   ;;  %s661_s3 = inlined_call_operand.vmem [shape: f32[20,32], index: 3, kind: input, shape index: {}]   ;;  %s662_s4 = inlined_call_operand.vmem [shape: f32[32,50], index: 4, kind: input, shape index: {}]   ;;  %s663_s5 = inlined_call_operand.vmem [shape: f32[1,512], index: 5, kind: input, shape index: {}]   ;;  %s664_s6 = inlined_call_operand.hbm [shape: f32[8,50], index: 6, kind: output, shape index: {}]  }
   0x1   :  { %v25_v0 = vld [vmem:[%s659_s1] sm:$0xff]  ;;  %v26_v1 = vld [vmem:[%s659_s1 + $0x8] sm:$0xff]  ;;  %v27_v2 = vld [vmem:[%s659_s1 + $0x10] sm:$0xff]  ;;  %476 = vmatprep.subr.bf16.mxu0 %v530_v3  ;;  %485 = vmatprep.subr.bf16.mxu1 %v530_v3 }
   0x2   :  { %v477_v4 = vpack.c.bf16 %v26_v1, %v25_v0  ;;  %v28_v5 = vld [vmem:[%s659_s1 + $0x18] sm:$0xff]  ;;  %442 = vmatprep.mubr.msk.f32.mxu0 %vm531_vm0, %v532_v6  ;;  %v118_v7 = vld [vmem:[%s660_s2] sm:$0xff]  ;;  %453 = vmatprep.mubr.msk.f32.mxu1 %vm531_vm0, %v532_v6  ;;  %v119_v9 = vld [vmem:[%s660_s2 + $0x8] sm:$0xff] }
   0x3   :  { %v480_v8 = vpack.c.bf16 %v28_v5, %v27_v2 }
   0x4   :  { %478 = vmatpush3.bf16.msra.mxu0 %v477_v4 }
   0x5   :  { %11 = vsyncpa [#allocation3], 0  ;;  %479 = vmatprep.subr.bf16.mxu0 %v530_v3  ;;  %v29_v10 = vld [vmem:[%s659_s1 + $0x20] sm:$0xff]  ;;  %v30_v11 = vld [vmem:[%s659_s1 + $0x28] sm:$0xff]  ;;  %v486_v12 = vpack.c.bf16 %v119_v9, %v118_v7  ;;  %vm43_vm1 = vcmask 1041408   ;;  %vm39_vm2 = vcmask 408576  }
   0x6   :  { %v483_v13 = vpack.c.bf16 %v30_v11, %v29_v10  ;;  %v31_v14 = vld [vmem:[%s659_s1 + $0x30] sm:$0x3]  ;;  %v24_v15 = vld [vmem:[%s658_s0] sm:$0xff]  ;;  %v121_v17 = vld [vmem:[%s660_s2 + $0x18] sm:$0xff]  ;;  %vm129_vm3 = vcmask 261120   ;;  %vm218_vm4 = vcmask 1043456  }
   0x7   :  { %487 = vmatpush3.bf16.msra.mxu1 %v486_v12  ;;  %v120_v16 = vld [vmem:[%s660_s2 + $0x10] sm:$0xff]  ;;  %v396_v19 = vld [vmem:[%s663_s5] ss:$0 sm:$0xff]  ;;  %v205_v21 = vld [vmem:[%s661_s3 + $0x8] sm:$0xff]  ;;  %vm214_vm5 = vcmask 162816  }
   0x8   :  { %481 = vmatpush3.bf16.msra.mxu0 %v480_v8  ;;  %488 = vmatprep.subr.bf16.mxu1 %v530_v3  ;;  %v489_v18 = vpack.c.bf16 %v121_v17, %v120_v16  ;;  %v204_v20 = vld [vmem:[%s661_s3] sm:$0xff]  ;;  %v206_v27 = vld [vmem:[%s661_s3 + $0x10] sm:$0xf]  ;;  %v294_v29 = vld [vmem:[%s662_s4 + $0x8] sm:$0xff] }
   0x9   :  { %482 = vmatprep.subr.bf16.mxu0 %v530_v3  ;;  %v492_v25 = vpack.c.bf16 %v205_v21, %v204_v20  ;;  %v293_v28 = vld [vmem:[%s662_s4] sm:$0xff]  ;;  %v295_v36 = vld [vmem:[%s662_s4 + $0x10] sm:$0xff]  ;;  %v296_v37 = vld [vmem:[%s662_s4 + $0x18] sm:$0xff]  ;;  %s533_s4 = smov [#allocation2]  }
   0xa   :  { %v495_v30 = vpack.c.bf16 %v294_v29, %v293_v28  ;;  %v399_v31 = vld [vmem:[%s663_s5 + $0x1] ss:$0 sm:$0xff]  ;;  %v498_v38 = vpack.c.bf16 %v296_v37, %v295_v36  ;;  %v401_v39 = vld [vmem:[%s663_s5 + $0x2] ss:$0 sm:$0xff]  ;;  %v404_v44 = vld [vmem:[%s663_s5 + $0x3] ss:$0 sm:$0xff] }
   0xb   :  { %490 = vmatpush3.bf16.msra.mxu1 %v489_v18  ;;  %s388_s15 = sshll.u32 %s533_s4, 4  ;;  %s389_s15 = int_to_ptr.vmem [resolvable:$true] %s388_s15 }
   0xc   :  { %484 = vmatpush3.bf16.msra.mxu0 %v483_v13  ;;  %491 = vmatprep.subr.bf16.mxu1 %v530_v3  ;;  %s506_s16 = scalar_lea.vmem %s389_s15, 128  ;;  %p511_p1 = scmp.lt.s32.totalorder %s389_s15, %s389_s15 }
   0xd   :  { %440 = vmatprep.subr.mxu0 %v532_v6  ;;  %p507_p0 = scmp.ne.s32.totalorder %s389_s15, %s506_s16  ;;  %p512_p2 = scmp.lt.s32.totalorder %s506_s16, %s506_s16 }
   0xf   :  { %p513_p3 = por %p512_p2, %p511_p1 }
  0x10   :  { %441 = vmatpush3.msk.msra.mxu0 %vm43_vm1, %v31_v14 }
  0x11   :  { %443 = vmatmul.mubr.msk.f32.vlgmr.msra.gmra.mrb[0].mxu0 %vm39_vm2, %v24_v15  ;;  %494 = vmatprep.subr.bf16.mxu0 %v530_v3  ;;  %p514_p4 = pnand %p513_p3, %p507_p0 }
  0x12   :  { %473 = vmatprep.mubr.msk.f32.mxu0 %vm531_vm0, %v532_v6  ;;  %496 = vmatpush3.bf16.msra.mxu0 %v495_v30 }
  0x13   :  { %497 = vmatprep.subr.bf16.mxu0 %v530_v3 }
  0x16   :  { %499 = vmatpush3.bf16.msra.mxu0 %v498_v38 }
  0xe4   :  { %v113_v22 = vpop.f32.mrb[0].mxu0 }
  0xe5   :  { %v114_v23 = vadd.f32 %v396_v19, %v113_v22  ;;  %v444_v24 = vpop.f32.mrb[1].mxu0 }
  0xe7   :  { %v117_v26 = vmax.f32 %v114_v23, 0.0 }
  0xe9   :  { %454 = vmatmul.mubr.msk.f32.vlgmr.msra.gmra.mrb[0].mxu1 %vm129_vm3, %v117_v26 }
  0xea   :  { %493 = vmatpush3.bf16.msra.mxu1 %v492_v25  ;;  %462 = vmatprep.mubr.msk.f32.mxu1 %vm531_vm0, %v532_v6 }
  0xeb   :  { %460 = vmatprep.subr.mxu1 %v532_v6 }
  0xee   :  { %461 = vmatpush3.msk.msra.mxu1 %vm218_vm4, %v206_v27 }
 0x1bc   :  { %v199_v32 = vpop.f32.mrb[0].mxu1 }
 0x1bd   :  { %v200_v33 = vadd.f32 %v399_v31, %v199_v32  ;;  %v455_v34 = vpop.f32.mrb[1].mxu1 }
 0x1bf   :  { %v203_v35 = vmax.f32 %v200_v33, 0.0 }
 0x1c1   :  { %463 = vmatmul.mubr.msk.f32.vlgmr.msra.gmra.mrb[2].mxu1 %vm214_vm5, %v203_v35 }
 0x294   :  { %v288_v40 = vpop.f32.mrb[2].mxu1 }
 0x295   :  { %v289_v41 = vadd.f32 %v401_v39, %v288_v40  ;;  %v464_v42 = vpop.f32.mrb[3].mxu1 }
 0x297   :  { %v292_v43 = vmax.f32 %v289_v41, 0.0 }
 0x299   :  { %474 = vmatmul.mubr.msk.f32.vlgmr.msra.gmra.mrb[2].mxu0 %vm129_vm3, %v292_v43 }
 0x36c   :  { %v373_v45 = vpop.f32.mrb[2].mxu0 }
 0x36d   :  { %v374_v46 = vadd.f32 %v404_v44, %v373_v45  ;;  %v475_v47 = vpop.f32.mrb[3].mxu0 }
 0x36f   :  { %v377_v48 = vmul.f32 0.5, %v374_v46 }
 0x371   :  { %504 = vtanh.f32 %v377_v48 }
 0x37b   :  { %v505_v49 = vpop.eup %504 }
 0x37c   :  { %v379_v50 = vadd.f32 1.0, %v505_v49 }
 0x37e   :  { %v380_v51 = vmul.f32 0.5, %v379_v50 }
 0x380   :  { %381 = vst.msk [vmem:[#allocation2] sm:$0xff] %vm39_vm2, %v380_v51 }
 0x381   :  { %517 = shalt.err (!%p514_p4)
}
 0x382   :  { %s518_s18 = scalar_lea.hbm %s664_s6, 128 }
 0x383   :  { %p519_p5 = scmp.ne.s32.totalorder %s664_s6, %s518_s18  ;;  %p522_p6 = scmp.lt.u32.totalorder %s518_s18, %s664_s6 }
 0x385   :  { %p524_p7 = pnand %p522_p6, %p519_p5 }
 0x387   :  { %527 = shalt.err (!%p524_p7)
}
 0x388   :  { %391 = dma.vmem_to_hbm [thread:$0]  %s389_s15, 128, %s664_s6, [#allocation3]  }
 0x389   :  { %528 = dma.done.wait [#allocation3], 128  }
 0x38a   :  { %529 = vsyncadd [#allocation3], 4294967168 }
 0x38b   :  { %395 = vsyncpa [#allocation3], 1 }

</bundles_post_ra>
